<compile_context>
chip_gen: v6e
topology: v6e:2x2x1
jax: 0.10.0
libtpu: 0.0.40
codegen_flags: <defaults>
</compile_context>

<pallas_src>
import functools

import jax
import jax.numpy as jnp
from jax import lax
from jax.experimental import pallas as pl
from jax.experimental.pallas import tpu as pltpu


def _round_up(x, m):
    return (x + m - 1) // m * m


def _pad_gate_blocks(x, H, Hp):
    """Pad a (..., 4*H) tensor (PyTorch gate order i|f|g|o) to (..., 4*Hp),
    padding each gate block independently so in-kernel gate slices line up."""
    lead = x.shape[:-1]
    x = x.reshape(lead + (4, H))
    pad = [(0, 0)] * (x.ndim - 1) + [(0, Hp - H)]
    return jnp.pad(x, pad).reshape(lead + (4 * Hp,))


# -----------------------------------------------------------------------------
# Kernel 1: LSTM recurrence (single invocation) + hoisted attention projections
# -----------------------------------------------------------------------------
def lstm_kernel(T, Bp, Hp,
                emb_ref, h0_ref, c0_ref, wih_ref, whh_ref, b_ref,
                win_ref, woutq_ref,
                qw_ref, qproj_ref, hT_ref, cT_ref,
                gx_sc, rnn_sc):
    # Hoisted input projection for ALL timesteps: one (T*Bp, Ep)x(Ep, 4Hp)
    # bf16 MXU matmul with f32 accumulation; bias folded in here once.
    gx_sc[...] = (jnp.dot(emb_ref[...], wih_ref[...],
                          preferred_element_type=jnp.float32)
                  + b_ref[...])

    def step(t, carry):
        h, c = carry
        row = pl.multiple_of(t * Bp, Bp)            # aligned (8,128) tile offset
        gates = gx_sc[pl.ds(row, Bp), :] + jnp.dot(
            h.astype(jnp.bfloat16), whh_ref[...],
            preferred_element_type=jnp.float32)     # (Bp, 4Hp)
        i_g = jax.nn.sigmoid(gates[:, 0 * Hp:1 * Hp])
        f_g = jax.nn.sigmoid(gates[:, 1 * Hp:2 * Hp])
        g_g = jnp.tanh(gates[:, 2 * Hp:3 * Hp])
        o_g = jax.nn.sigmoid(gates[:, 3 * Hp:4 * Hp])
        c_new = f_g * c + i_g * g_g
        h_new = o_g * jnp.tanh(c_new)
        rnn_sc[pl.ds(row, Bp), :] = h_new
        return h_new, c_new

    h_fin, c_fin = lax.fori_loop(0, T, step, (h0_ref[...], c0_ref[...]))
    # Final state written exactly once (not per timestep).
    hT_ref[...] = h_fin
    cT_ref[...] = c_fin

    # Batch/time-independent attention projections, hoisted out of the
    # per-batch attention grid: (T*Bp)-row matmuls keep the MXU filled.
    rnn_bf = rnn_sc[...].astype(jnp.bfloat16)
    qw_ref[...] = jnp.dot(rnn_bf, win_ref[...],
                          preferred_element_type=jnp.float32
                          ).astype(jnp.bfloat16)
    qproj_ref[...] = jnp.dot(rnn_bf, woutq_ref[...],
                             preferred_element_type=jnp.float32)


def run_lstm(emb2d, h0, c0, w_ih, w_hh, b, w_in, w_out_q, T, Bp, Hp, Ep):
    out_shape = (
        jax.ShapeDtypeStruct((T * Bp, Hp), jnp.bfloat16),   # qw    = rnn @ W_in
        jax.ShapeDtypeStruct((T * Bp, Hp), jnp.float32),    # qproj = rnn @ W_out_q
        jax.ShapeDtypeStruct((Bp, Hp), jnp.float32),        # final h
        jax.ShapeDtypeStruct((Bp, Hp), jnp.float32),        # final c
    )
    kern = functools.partial(lstm_kernel, T, Bp, Hp)
    return pl.pallas_call(
        kern,
        out_shape=out_shape,
        grid_spec=pltpu.PrefetchScalarGridSpec(
            num_scalar_prefetch=0,
            grid=(1,),
            in_specs=[
                pl.BlockSpec((T * Bp, Ep), lambda i: (0, 0)),      # emb (flattened)
                pl.BlockSpec((Bp, Hp), lambda i: (0, 0)),          # h0
                pl.BlockSpec((Bp, Hp), lambda i: (0, 0)),          # c0
                pl.BlockSpec((Ep, 4 * Hp), lambda i: (0, 0)),      # W_ih (bf16)
                pl.BlockSpec((Hp, 4 * Hp), lambda i: (0, 0)),      # W_hh (bf16)
                pl.BlockSpec((1, 4 * Hp), lambda i: (0, 0)),       # bias (f32)
                pl.BlockSpec((Hp, Hp), lambda i: (0, 0)),          # W_in (bf16)
                pl.BlockSpec((Hp, Hp), lambda i: (0, 0)),          # W_out_q (bf16)
            ],
            out_specs=[
                pl.BlockSpec((T * Bp, Hp), lambda i: (0, 0)),
                pl.BlockSpec((T * Bp, Hp), lambda i: (0, 0)),
                pl.BlockSpec((Bp, Hp), lambda i: (0, 0)),
                pl.BlockSpec((Bp, Hp), lambda i: (0, 0)),
            ],
            scratch_shapes=[
                pltpu.VMEM((T * Bp, 4 * Hp), jnp.float32),   # precomputed gates_x
                pltpu.VMEM((T * Bp, Hp), jnp.float32),       # rnn outputs
            ],
        ),
        compiler_params=pltpu.CompilerParams(
            dimension_semantics=("arbitrary",)),
    )(emb2d, h0, c0, w_ih, w_hh, b, w_in, w_out_q)


# -----------------------------------------------------------------------------
# Kernel 2: GlobalAttention ("general", softmax) — grid axis = batch (parallel)
# -----------------------------------------------------------------------------
def attn_kernel(qw_ref, qproj_ref, mem_ref, mask_ref, woutc_ref,
                out_ref, align_ref):
    qw = qw_ref[0]        # (T, Hp)  bf16, already projected by W_in
    mem = mem_ref[0]      # (Sp, Hp) bf16

    # scores = qw @ mem^T via dot_general contracting the H axes (no XLU
    # transpose of the memory bank), f32 accumulation, additive mask.
    scores = lax.dot_general(
        qw, mem, dimension_numbers=(((1,), (1,)), ((), ())),
        preferred_element_type=jnp.float32) + mask_ref[0]          # (T, Sp)

    m = jnp.max(scores, axis=-1, keepdims=True)
    e = jnp.exp(scores - m)
    align = e * pl.reciprocal(jnp.sum(e, axis=-1, keepdims=True), approx=False)

    ctx = jnp.dot(align.astype(jnp.bfloat16), mem,
                  preferred_element_type=jnp.float32)              # (T, Hp)
    attn_h = jnp.tanh(
        jnp.dot(ctx.astype(jnp.bfloat16), woutc_ref[...],
                preferred_element_type=jnp.float32)
        + qproj_ref[0])                                            # (T, Hp)

    out_ref[0] = attn_h
    align_ref[0] = align


def run_attention(qw_bth, qproj_bth, mem_bsh, mask_b1s, w_out_c, T, Bp, Sp, Hp):
    out_shape = (
        jax.ShapeDtypeStruct((Bp, T, Hp), jnp.float32),
        jax.ShapeDtypeStruct((Bp, T, Sp), jnp.float32),
    )
    return pl.pallas_call(
        attn_kernel,
        out_shape=out_shape,
        grid_spec=pltpu.PrefetchScalarGridSpec(
            num_scalar_prefetch=0,
            grid=(Bp,),
            in_specs=[
                pl.BlockSpec((1, T, Hp), lambda b: (b, 0, 0)),   # qw (bf16)
                pl.BlockSpec((1, T, Hp), lambda b: (b, 0, 0)),   # qproj (f32)
                pl.BlockSpec((1, Sp, Hp), lambda b: (b, 0, 0)),  # memory bank (bf16)
                pl.BlockSpec((1, 1, Sp), lambda b: (b, 0, 0)),   # additive mask
                pl.BlockSpec((Hp, Hp), lambda b: (0, 0)),        # linear_out ctx half
            ],
            out_specs=[
                pl.BlockSpec((1, T, Hp), lambda b: (b, 0, 0)),
                pl.BlockSpec((1, T, Sp), lambda b: (b, 0, 0)),
            ],
        ),
        compiler_params=pltpu.CompilerParams(
            dimension_semantics=("parallel",)),
    )(qw_bth, qproj_bth, mem_bsh, mask_b1s, w_out_c)


# -----------------------------------------------------------------------------
# Python-side module (parameter container + forward glue)
# -----------------------------------------------------------------------------
class RNNDecoderBasePallas:
    """JAX/Pallas version of RNNDecoderBase (StdRNNDecoder concretization)."""

    LANE = 128
    SUB = 8

    def __init__(self, vocab_size, emb_dim, hidden_size, key,
                 bidirectional_encoder=False):
        self.hidden_size = hidden_size
        self.num_layers = 1
        self.bidirectional_encoder = bidirectional_encoder
        H, E = hidden_size, emb_dim
        Hp = _round_up(H, self.LANE)
        Ep = _round_up(E, self.LANE)
        self.H, self.E, self.Hp, self.Ep = H, E, Hp, Ep

        ks = jax.random.split(key, 8)
        s = 0.1
        # embeddings (table kept f32, E padded to lane width)
        emb_tbl = s * jax.random.normal(ks[0], (vocab_size, E), jnp.float32)
        self.embedding = jnp.pad(emb_tbl, ((0, 0), (0, Ep - E)))
        # LSTM (PyTorch gate order i, f, g, o), stored transposed for x @ W,
        # gate blocks padded independently to Hp, matmul operands in bf16.
        w_ih = s * jax.random.normal(ks[1], (E, 4 * H), jnp.float32)
        w_hh = s * jax.random.normal(ks[2], (H, 4 * H), jnp.float32)
        b_ih = s * jax.random.normal(ks[3], (4 * H,), jnp.float32)
        b_hh = s * jax.random.normal(ks[4], (4 * H,), jnp.float32)
        w_ih = jnp.pad(_pad_gate_blocks(w_ih, H, Hp), ((0, Ep - E), (0, 0)))
        w_hh = jnp.pad(_pad_gate_blocks(w_hh, H, Hp), ((0, Hp - H), (0, 0)))
        self.w_ih = w_ih.astype(jnp.bfloat16)
        self.w_hh = w_hh.astype(jnp.bfloat16)
        self.b = _pad_gate_blocks(b_ih + b_hh, H, Hp).reshape(1, 4 * Hp)
        # GlobalAttention "general": linear_in (H->H, no bias),
        # linear_out (2H->H, no bias) split into ctx / query halves.
        def padHH(w):
            return jnp.pad(w, ((0, Hp - H), (0, Hp - H))).astype(jnp.bfloat16)
        self.w_in = padHH(s * jax.random.normal(ks[5], (H, H), jnp.float32))
        self.w_out_c = padHH(s * jax.random.normal(ks[6], (H, H), jnp.float32))
        self.w_out_q = padHH(s * jax.random.normal(ks[7], (H, H), jnp.float32))

    # ---- RNNDecoderState equivalent -----------------------------------------
    def init_decoder_state(self, encoder_final):
        """encoder_final: tuple (h, c), each [num_layers, B, H]."""
        h, c = encoder_final
        B = h.shape[1]
        return {
            "hidden": (h, c),
            "input_feed": jnp.zeros((1, B, self.hidden_size), jnp.float32),
            "coverage": None,
        }

    # ---- forward -------------------------------------------------------------
    def forward(self, tgt, memory_bank, state, memory_lengths=None):
        """
        tgt           : int32 [tgt_len, batch, 1]
        memory_bank   : f32   [src_len, batch, hidden]
        state         : dict from init_decoder_state
        memory_lengths: int32 [batch] or None
        """
        T, B, _ = tgt.shape
        S = memory_bank.shape[0]
        H, Hp, Ep = self.H, self.Hp, self.Ep
        assert tgt.shape[1] == memory_bank.shape[1]   # aeq(tgt_batch, memory_batch)

        Bp = _round_up(B, self.SUB)
        Sp = _round_up(S, self.LANE)

        # embedding lookup (XLA glue), padded to lane/sublane-dense tiles
        emb = jnp.take(self.embedding, tgt[:, :, 0], axis=0)           # (T, B, Ep)
        emb = jnp.pad(emb, ((0, 0), (0, Bp - B), (0, 0)))
        emb2d = emb.reshape(T * Bp, Ep).astype(jnp.bfloat16)

        h0 = jnp.pad(state["hidden"][0][0], ((0, Bp - B), (0, Hp - H)))
        c0 = jnp.pad(state["hidden"][1][0], ((0, Bp - B), (0, Hp - H)))

        qw, qproj, hTp, cTp = run_lstm(
            emb2d, h0, c0, self.w_ih, self.w_hh, self.b,
            self.w_in, self.w_out_q, T, Bp, Hp, Ep)

        # batch-major views for the attention kernel (XLA glue)
        qw_bth = jnp.transpose(qw.reshape(T, Bp, Hp), (1, 0, 2))       # (Bp, T, Hp)
        qproj_bth = jnp.transpose(qproj.reshape(T, Bp, Hp), (1, 0, 2))

        mem = jnp.transpose(memory_bank, (1, 0, 2))                    # (B, S, H)
        mem = jnp.pad(mem, ((0, Bp - B), (0, Sp - S), (0, Hp - H)))
        mem = mem.astype(jnp.bfloat16)

        if memory_lengths is not None:
            lengths = jnp.pad(memory_lengths.astype(jnp.int32), (0, Bp - B),
                              constant_values=S)
        else:
            lengths = jnp.full((Bp,), S, jnp.int32)
        valid = jnp.arange(Sp, dtype=jnp.int32)[None, :] < lengths[:, None]
        mask = jnp.where(valid, 0.0, -1e9).astype(jnp.float32).reshape(Bp, 1, Sp)

        attn_h_p, align_p = run_attention(
            qw_bth, qproj_bth, mem, mask, self.w_out_c, T, Bp, Sp, Hp)

        decoder_outputs = jnp.transpose(attn_h_p, (1, 0, 2))[:, :B, :H]  # (T, B, H)
        attns = {"std": jnp.transpose(align_p, (1, 0, 2))[:, :B, :S]}    # (T, B, S)
        # dropout(p=0.0) -> identity

        hT = hTp[:B, :H]
        cT = cTp[:B, :H]
        # state.update_state(decoder_final, final_output.unsqueeze(0), coverage)
        new_state = {
            "hidden": (hT[None], cT[None]),
            "input_feed": decoder_outputs[-1][None],
            "coverage": None,
        }
        return decoder_outputs, new_state, attns


# -----------------------------------------------------------------------------
if __name__ == "__main__":
    key = jax.random.PRNGKey(0)
    k_params, k_tgt, k_mem, k_h, k_c = jax.random.split(key, 5)

    VOCAB, E, H = 20, 16, 32
    T, B, S = 6, 2, 10

    decoder = RNNDecoderBasePallas(VOCAB, E, H, k_params)

    tgt = jax.random.randint(k_tgt, (T, B, 1), 0, VOCAB, dtype=jnp.int32)
    memory_bank = 0.1 * jax.random.normal(k_mem, (S, B, H), jnp.float32)
    enc_h = 0.1 * jax.random.normal(k_h, (1, B, H), jnp.float32)
    enc_c = 0.1 * jax.random.normal(k_c, (1, B, H), jnp.float32)
    memory_lengths = jnp.array([10, 7], dtype=jnp.int32)

    state = decoder.init_decoder_state((enc_h, enc_c))
    decoder_outputs, new_state, attns = decoder.forward(
        tgt, memory_bank, state, memory_lengths=memory_lengths)

    jax.block_until_ready(decoder_outputs)
    jax.block_until_ready(new_state["hidden"])
    jax.block_until_ready(attns["std"])

    assert decoder_outputs.shape == (T, B, H)
    assert attns["std"].shape == (T, B, S)
    assert new_state["hidden"][0].shape == (1, B, H)
    assert new_state["input_feed"].shape == (1, B, H)
    # attention rows sum to 1 and masked positions are ~0
    row_sums = jnp.sum(attns["std"], axis=-1)
    assert jnp.allclose(row_sums, 1.0, atol=1e-4)
    assert jnp.all(attns["std"][:, 1, 7:] < 1e-6)

    print("KERNEL_OK")
</pallas_src>

<mosaic_0001>
module attributes {stable_mosaic.version = 11 : i64} {
  func.func @lstm_kernel(%arg0: i32, %arg1: memref<48x128xbf16, #tpu.memory_space<vmem>>, %arg2: memref<8x128xf32, #tpu.memory_space<vmem>>, %arg3: memref<8x128xf32, #tpu.memory_space<vmem>>, %arg4: memref<128x512xbf16, #tpu.memory_space<vmem>>, %arg5: memref<128x512xbf16, #tpu.memory_space<vmem>>, %arg6: memref<1x512xf32, #tpu.memory_space<vmem>>, %arg7: memref<128x128xbf16, #tpu.memory_space<vmem>>, %arg8: memref<128x128xbf16, #tpu.memory_space<vmem>>, %arg9: memref<48x128xbf16, #tpu.memory_space<vmem>>, %arg10: memref<48x128xf32, #tpu.memory_space<vmem>>, %arg11: memref<8x128xf32, #tpu.memory_space<vmem>>, %arg12: memref<8x128xf32, #tpu.memory_space<vmem>>, %arg13: memref<48x512xf32, #tpu.memory_space<vmem>>, %arg14: memref<48x128xf32, #tpu.memory_space<vmem>>) attributes {dimension_semantics = [#tpu.dimension_semantics<arbitrary>], iteration_bounds = array<i64: 1>, scalar_prefetch = 0 : i64, scratch_operands = 2 : i64, tpu.core_type = #tpu.core_type<tc>, window_params = [{pipeline_mode = #tpu.pipeline_mode<synchronous>, transform_indices = @transform_0, window_bounds = array<i64: 48, 128>}, {pipeline_mode = #tpu.pipeline_mode<synchronous>, transform_indices = @transform_1, window_bounds = array<i64: 8, 128>}, {pipeline_mode = #tpu.pipeline_mode<synchronous>, transform_indices = @transform_2, window_bounds = array<i64: 8, 128>}, {pipeline_mode = #tpu.pipeline_mode<synchronous>, transform_indices = @transform_3, window_bounds = array<i64: 128, 512>}, {pipeline_mode = #tpu.pipeline_mode<synchronous>, transform_indices = @transform_4, window_bounds = array<i64: 128, 512>}, {pipeline_mode = #tpu.pipeline_mode<synchronous>, transform_indices = @transform_5, window_bounds = array<i64: 1, 512>}, {pipeline_mode = #tpu.pipeline_mode<synchronous>, transform_indices = @transform_6, window_bounds = array<i64: 128, 128>}, {pipeline_mode = #tpu.pipeline_mode<synchronous>, transform_indices = @transform_7, window_bounds = array<i64: 128, 128>}, {pipeline_mode = #tpu.pipeline_mode<synchronous>, transform_indices = @transform_8, window_bounds = array<i64: 48, 128>}, {pipeline_mode = #tpu.pipeline_mode<synchronous>, transform_indices = @transform_9, window_bounds = array<i64: 48, 128>}, {pipeline_mode = #tpu.pipeline_mode<synchronous>, transform_indices = @transform_10, window_bounds = array<i64: 8, 128>}, {pipeline_mode = #tpu.pipeline_mode<synchronous>, transform_indices = @transform_11, window_bounds = array<i64: 8, 128>}]} {
    %c0 = arith.constant 0 : index
    %c0_0 = arith.constant 0 : index
    %0 = vector.load %arg1[%c0, %c0_0] : memref<48x128xbf16, #tpu.memory_space<vmem>>, vector<48x128xbf16>
    %c0_1 = arith.constant 0 : index
    %c0_2 = arith.constant 0 : index
    %1 = vector.load %arg4[%c0_1, %c0_2] : memref<128x512xbf16, #tpu.memory_space<vmem>>, vector<128x512xbf16>
    %cst = arith.constant dense<0.000000e+00> : vector<48x512xf32>
    %2 = tpu.matmul %0, %1, %cst {dimension_numbers = #tpu.dot_dimension_numbers<[1], [0], [0], [1], [0, 0, 1, 1], [], []>} : vector<48x128xbf16>, vector<128x512xbf16>, vector<48x512xf32> -> vector<48x512xf32>
    %c0_3 = arith.constant 0 : index
    %c0_4 = arith.constant 0 : index
    %3 = vector.load %arg6[%c0_3, %c0_4] : memref<1x512xf32, #tpu.memory_space<vmem>>, vector<1x512xf32>
    %4 = vector.broadcast %3 : vector<1x512xf32> to vector<48x512xf32>
    %5 = arith.addf %2, %4 : vector<48x512xf32>
    %c0_5 = arith.constant 0 : index
    %c0_6 = arith.constant 0 : index
    %6 = vector.load %arg13[%c0_5, %c0_6] : memref<48x512xf32, #tpu.memory_space<vmem>>, vector<48x512xf32>
    tpu.vector_store %arg13[%c0_5, %c0_6], %5 {strides = array<i32>} : memref<48x512xf32, #tpu.memory_space<vmem>>, vector<48x512xf32>,
    %c0_7 = arith.constant 0 : index
    %c0_8 = arith.constant 0 : index
    %7 = vector.load %arg2[%c0_7, %c0_8] : memref<8x128xf32, #tpu.memory_space<vmem>>, vector<8x128xf32>
    %c0_9 = arith.constant 0 : index
    %c0_10 = arith.constant 0 : index
    %8 = vector.load %arg3[%c0_9, %c0_10] : memref<8x128xf32, #tpu.memory_space<vmem>>, vector<8x128xf32>
    %c0_i32 = arith.constant 0 : i32
    %c6_i32 = arith.constant 6 : i32
    %9 = arith.addi %c0_i32, %c6_i32 : i32
    %c1_i32 = arith.constant 1 : i32
    %10:2 = scf.for %arg15 = %c0_i32 to %9 step %c1_i32 iter_args(%arg16 = %7, %arg17 = %8) -> (vector<8x128xf32>, vector<8x128xf32>)  : i32 {
      %c8_i32 = arith.constant 8 : i32
      %22 = arith.muli %arg15, %c8_i32 : i32
      %23 = tpu.assume_multiple %22, 8 : i32
      %24 = arith.index_cast %23 : i32 to index
      %c0_28 = arith.constant 0 : index
      %25 = vector.load %arg13[%24, %c0_28] : memref<48x512xf32, #tpu.memory_space<vmem>>, vector<8x512xf32>
      %26 = arith.truncf %arg16 : vector<8x128xf32> to vector<8x128xbf16>
      %c0_29 = arith.constant 0 : index
      %c0_30 = arith.constant 0 : index
      %27 = vector.load %arg5[%c0_29, %c0_30] : memref<128x512xbf16, #tpu.memory_space<vmem>>, vector<128x512xbf16>
      %cst_31 = arith.constant dense<0.000000e+00> : vector<8x512xf32>
      %28 = tpu.matmul %26, %27, %cst_31 {dimension_numbers = #tpu.dot_dimension_numbers<[1], [0], [0], [1], [0, 0, 1, 1], [], []>} : vector<8x128xbf16>, vector<128x512xbf16>, vector<8x512xf32> -> vector<8x512xf32>
      %29 = arith.addf %25, %28 : vector<8x512xf32>
      %30 = vector.extract_strided_slice %29 {offsets = [0, 0], sizes = [8, 128], strides = [1, 1]} : vector<8x512xf32> to vector<8x128xf32>
      %31 = arith.negf %30 : vector<8x128xf32>
      %32 = math.exp %31 : vector<8x128xf32>
      %cst_32 = arith.constant 1.000000e+00 : f32
      %33 = vector.broadcast %cst_32 : f32 to vector<8x128xf32>
      %34 = arith.addf %33, %32 : vector<8x128xf32>
      %35 = arith.divf %33, %34 : vector<8x128xf32>
      %36 = vector.extract_strided_slice %29 {offsets = [0, 128], sizes = [8, 128], strides = [1, 1]} : vector<8x512xf32> to vector<8x128xf32>
      %37 = arith.negf %36 : vector<8x128xf32>
      %38 = math.exp %37 : vector<8x128xf32>
      %cst_33 = arith.constant 1.000000e+00 : f32
      %39 = vector.broadcast %cst_33 : f32 to vector<8x128xf32>
      %40 = arith.addf %39, %38 : vector<8x128xf32>
      %41 = arith.divf %39, %40 : vector<8x128xf32>
      %42 = vector.extract_strided_slice %29 {offsets = [0, 256], sizes = [8, 128], strides = [1, 1]} : vector<8x512xf32> to vector<8x128xf32>
      %43 = math.tanh %42 : vector<8x128xf32>
      %44 = vector.extract_strided_slice %29 {offsets = [0, 384], sizes = [8, 128], strides = [1, 1]} : vector<8x512xf32> to vector<8x128xf32>
      %45 = arith.negf %44 : vector<8x128xf32>
      %46 = math.exp %45 : vector<8x128xf32>
      %cst_34 = arith.constant 1.000000e+00 : f32
      %47 = vector.broadcast %cst_34 : f32 to vector<8x128xf32>
      %48 = arith.addf %47, %46 : vector<8x128xf32>
      %49 = arith.divf %47, %48 : vector<8x128xf32>
      %50 = arith.mulf %41, %arg17 : vector<8x128xf32>
      %51 = arith.mulf %35, %43 : vector<8x128xf32>
      %52 = arith.addf %50, %51 : vector<8x128xf32>
      %53 = math.tanh %52 : vector<8x128xf32>
      %54 = arith.mulf %49, %53 : vector<8x128xf32>
      %55 = arith.index_cast %23 : i32 to index
      %c0_35 = arith.constant 0 : index
      %56 = vector.load %arg14[%55, %c0_35] : memref<48x128xf32, #tpu.memory_space<vmem>>, vector<8x128xf32>
      tpu.vector_store %arg14[%55, %c0_35], %54 {strides = array<i32>} : memref<48x128xf32, #tpu.memory_space<vmem>>, vector<8x128xf32>,
      scf.yield %54, %52 : vector<8x128xf32>, vector<8x128xf32>
    }
    %c6_i32_11 = arith.constant 6 : i32
    %c0_12 = arith.constant 0 : index
    %c0_13 = arith.constant 0 : index
    %11 = vector.load %arg11[%c0_12, %c0_13] : memref<8x128xf32, #tpu.memory_space<vmem>>, vector<8x128xf32>
    tpu.vector_store %arg11[%c0_12, %c0_13], %10#0 {strides = array<i32>} : memref<8x128xf32, #tpu.memory_space<vmem>>, vector<8x128xf32>,
    %c0_14 = arith.constant 0 : index
    %c0_15 = arith.constant 0 : index
    %12 = vector.load %arg12[%c0_14, %c0_15] : memref<8x128xf32, #tpu.memory_space<vmem>>, vector<8x128xf32>
    tpu.vector_store %arg12[%c0_14, %c0_15], %10#1 {strides = array<i32>} : memref<8x128xf32, #tpu.memory_space<vmem>>, vector<8x128xf32>,
    %c0_16 = arith.constant 0 : index
    %c0_17 = arith.constant 0 : index
    %13 = vector.load %arg14[%c0_16, %c0_17] : memref<48x128xf32, #tpu.memory_space<vmem>>, vector<48x128xf32>
    %14 = arith.truncf %13 : vector<48x128xf32> to vector<48x128xbf16>
    %c0_18 = arith.constant 0 : index
    %c0_19 = arith.constant 0 : index
    %15 = vector.load %arg7[%c0_18, %c0_19] : memref<128x128xbf16, #tpu.memory_space<vmem>>, vector<128x128xbf16>
    %cst_20 = arith.constant dense<0.000000e+00> : vector<48x128xf32>
    %16 = tpu.matmul %14, %15, %cst_20 {dimension_numbers = #tpu.dot_dimension_numbers<[1], [0], [0], [1], [0, 0, 1, 1], [], []>} : vector<48x128xbf16>, vector<128x128xbf16>, vector<48x128xf32> -> vector<48x128xf32>
    %17 = arith.truncf %16 : vector<48x128xf32> to vector<48x128xbf16>
    %c0_21 = arith.constant 0 : index
    %c0_22 = arith.constant 0 : index
    %18 = vector.load %arg9[%c0_21, %c0_22] : memref<48x128xbf16, #tpu.memory_space<vmem>>, vector<48x128xbf16>
    tpu.vector_store %arg9[%c0_21, %c0_22], %17 {strides = array<i32>} : memref<48x128xbf16, #tpu.memory_space<vmem>>, vector<48x128xbf16>,
    %c0_23 = arith.constant 0 : index
    %c0_24 = arith.constant 0 : index
    %19 = vector.load %arg8[%c0_23, %c0_24] : memref<128x128xbf16, #tpu.memory_space<vmem>>, vector<128x128xbf16>
    %cst_25 = arith.constant dense<0.000000e+00> : vector<48x128xf32>
    %20 = tpu.matmul %14, %19, %cst_25 {dimension_numbers = #tpu.dot_dimension_numbers<[1], [0], [0], [1], [0, 0, 1, 1], [], []>} : vector<48x128xbf16>, vector<128x128xbf16>, vector<48x128xf32> -> vector<48x128xf32>
    %c0_26 = arith.constant 0 : index
    %c0_27 = arith.constant 0 : index
    %21 = vector.load %arg10[%c0_26, %c0_27] : memref<48x128xf32, #tpu.memory_space<vmem>>, vector<48x128xf32>
    tpu.vector_store %arg10[%c0_26, %c0_27], %20 {strides = array<i32>} : memref<48x128xf32, #tpu.memory_space<vmem>>, vector<48x128xf32>,
    return
  }
  func.func @transform_0(%arg0: i32) -> (i32, i32) {
    %c0_i32 = arith.constant 0 : i32
    %c0_i32_0 = arith.constant 0 : i32
    %c0_i32_1 = arith.constant 0 : i32
    return %c0_i32, %c0_i32_0 : i32, i32
  }
  func.func @transform_1(%arg0: i32) -> (i32, i32) {
    %c0_i32 = arith.constant 0 : i32
    %c0_i32_0 = arith.constant 0 : i32
    %c0_i32_1 = arith.constant 0 : i32
    return %c0_i32, %c0_i32_0 : i32, i32
  }
  func.func @transform_2(%arg0: i32) -> (i32, i32) {
    %c0_i32 = arith.constant 0 : i32
    %c0_i32_0 = arith.constant 0 : i32
    %c0_i32_1 = arith.constant 0 : i32
    return %c0_i32, %c0_i32_0 : i32, i32
  }
  func.func @transform_3(%arg0: i32) -> (i32, i32) {
    %c0_i32 = arith.constant 0 : i32
    %c0_i32_0 = arith.constant 0 : i32
    %c0_i32_1 = arith.constant 0 : i32
    return %c0_i32, %c0_i32_0 : i32, i32
  }
  func.func @transform_4(%arg0: i32) -> (i32, i32) {
    %c0_i32 = arith.constant 0 : i32
    %c0_i32_0 = arith.constant 0 : i32
    %c0_i32_1 = arith.constant 0 : i32
    return %c0_i32, %c0_i32_0 : i32, i32
  }
  func.func @transform_5(%arg0: i32) -> (i32, i32) {
    %c0_i32 = arith.constant 0 : i32
    %c0_i32_0 = arith.constant 0 : i32
    %c0_i32_1 = arith.constant 0 : i32
    return %c0_i32, %c0_i32_0 : i32, i32
  }
  func.func @transform_6(%arg0: i32) -> (i32, i32) {
    %c0_i32 = arith.constant 0 : i32
    %c0_i32_0 = arith.constant 0 : i32
    %c0_i32_1 = arith.constant 0 : i32
    return %c0_i32, %c0_i32_0 : i32, i32
  }
  func.func @transform_7(%arg0: i32) -> (i32, i32) {
    %c0_i32 = arith.constant 0 : i32
    %c0_i32_0 = arith.constant 0 : i32
    %c0_i32_1 = arith.constant 0 : i32
    return %c0_i32, %c0_i32_0 : i32, i32
  }
  func.func @transform_8(%arg0: i32) -> (i32, i32) {
    %c0_i32 = arith.constant 0 : i32
    %c0_i32_0 = arith.constant 0 : i32
    %c0_i32_1 = arith.constant 0 : i32
    return %c0_i32, %c0_i32_0 : i32, i32
  }
  func.func @transform_9(%arg0: i32) -> (i32, i32) {
    %c0_i32 = arith.constant 0 : i32
    %c0_i32_0 = arith.constant 0 : i32
    %c0_i32_1 = arith.constant 0 : i32
    return %c0_i32, %c0_i32_0 : i32, i32
  }
  func.func @transform_10(%arg0: i32) -> (i32, i32) {
    %c0_i32 = arith.constant 0 : i32
    %c0_i32_0 = arith.constant 0 : i32
    %c0_i32_1 = arith.constant 0 : i32
    return %c0_i32, %c0_i32_0 : i32, i32
  }
  func.func @transform_11(%arg0: i32) -> (i32, i32) {
    %c0_i32 = arith.constant 0 : i32
    %c0_i32_0 = arith.constant 0 : i32
    %c0_i32_1 = arith.constant 0 : i32
    return %c0_i32, %c0_i32_0 : i32, i32
  }
}

</mosaic_0001>

<bundles_post_ra>
// kernel: tpu_custom_call.1
= control target key start
LH: loop header
LB: loop body
LE: loop exit
PB: predicated region body
PF: predicated region fallthrough
CT: control target
= control target key end

     0   :  { %17 = vsyncpa [#allocation5], 0  ;;  %s2076_s0 = inlined_call_operand.hbm [shape: bf16[48,128], index: 0, kind: input, shape index: {}]   ;;  %s2077_s1 = inlined_call_operand.hbm [shape: f32[8,128], index: 1, kind: input, shape index: {}]   ;;  %s2078_s2 = inlined_call_operand.hbm [shape: f32[8,128], index: 2, kind: input, shape index: {}]   ;;  %s2079_s3 = inlined_call_operand.hbm [shape: bf16[128,512], index: 3, kind: input, shape index: {}]   ;;  %s2080_s4 = inlined_call_operand.hbm [shape: bf16[128,512], index: 4, kind: input, shape index: {}]   ;;  %s2081_s5 = inlined_call_operand.vmem [shape: f32[1,512], index: 5, kind: input, shape index: {}]   ;;  %s2082_s6 = inlined_call_operand.hbm [shape: bf16[128,128], index: 6, kind: input, shape index: {}]   ;;  %s2083_s7 = inlined_call_operand.hbm [shape: bf16[128,128], index: 7, kind: input, shape index: {}]   ;;  %s2084_s8 = inlined_call_operand.hbm [shape: bf16[48,128], index: 8, kind: output, shape index: {0}]   ;;  %s2085_s9 = inlined_call_operand.hbm [shape: f32[48,128], index: 9, kind: output, shape index: {1}]   ;;  %s2086_s10 = inlined_call_operand.hbm [shape: f32[8,128], index: 10, kind: output, shape index: {2}]   ;;  %s2087_s11 = inlined_call_operand.hbm [shape: f32[8,128], index: 11, kind: output, shape index: {3}]  }
   0x1   :  { %18 = vsyncpa [#allocation8], 0 }
   0x2   :  { %19 = vsyncpa [#allocation11], 0 }
   0x3   :  { %20 = vsyncpa [#allocation14], 0 }
   0x4   :  { %21 = vsyncpa [#allocation6], 0 }
   0x5   :  { %22 = vsyncpa [#allocation18], 0 }
   0x6   :  { %23 = vsyncpa [#allocation21], 0  ;;  %s1839_s17 = smov [#allocation7]   ;;  %s1840_s19 = smov [#allocation10]  }
   0x7   :  { %s42_s18 = sshll.u32 %s1839_s17, 4  ;;  %s61_s20 = sshll.u32 %s1840_s19, 4  ;;  %s43_s18 = int_to_ptr.vmem [resolvable:$true] %s42_s18  ;;  %s62_s20 = int_to_ptr.vmem [resolvable:$true] %s61_s20 }
   0x8   :  { %s1589_s21 = scalar_lea.vmem %s43_s18, 128  ;;  %p1594_p1 = scmp.lt.s32.totalorder %s43_s18, %s43_s18 }
   0x9   :  { %p1590_p0 = scmp.ne.s32.totalorder %s43_s18, %s1589_s21  ;;  %p1595_p2 = scmp.lt.s32.totalorder %s1589_s21, %s1589_s21 }
   0xb   :  { %p1596_p3 = por %p1595_p2, %p1594_p1 }
   0xd   :  { %p1597_p4 = pnand %p1596_p3, %p1590_p0 }
   0xf   :  { %1600 = shalt.err (!%p1597_p4)
}
  0x10   :  { %45 = dma.hbm_to_vmem [thread:$0]  %s2077_s1, 128, %s43_s18, [#allocation8]  }
  0x11   :  { %s1609_s24 = scalar_lea.vmem %s62_s20, 4096  ;;  %p1614_p6 = scmp.lt.s32.totalorder %s62_s20, %s62_s20 }
  0x12   :  { %p1610_p5 = scmp.ne.s32.totalorder %s62_s20, %s1609_s24  ;;  %p1615_p7 = scmp.lt.s32.totalorder %s1609_s24, %s1609_s24 }
  0x14   :  { %p1616_p8 = por %p1615_p7, %p1614_p6 }
  0x16   :  { %p1617_p9 = pnand %p1616_p8, %p1610_p5 }
  0x18   :  { %1620 = shalt.err (!%p1617_p9)
}
  0x19   :  { %s1841_s25 = smov 256   ;;  %s1842_s26 = smov 16  }
  0x1a   :  { %67 = dma.hbm_to_vmem [thread:$0]  %s2079_s3, 4096, %s62_s20, [#allocation11], %s1841_s25, %s1841_s25, %s1842_s26  }
  0x1b   :  { %s1843_s29 = smov [#allocation13]   ;;  %s1844_s12 = smov [#allocation4]  }
  0x1c   :  { %s87_s30 = sshll.u32 %s1843_s29, 4  ;;  %s29_s1 = sshll.u32 %s1844_s12, 4  ;;  %s88_s30 = int_to_ptr.vmem [resolvable:$true] %s87_s30  ;;  %s30_s1 = int_to_ptr.vmem [resolvable:$true] %s29_s1 }
  0x1d   :  { %s1629_s13 = scalar_lea.vmem %s88_s30, 1024  ;;  %p1634_p11 = scmp.lt.s32.totalorder %s88_s30, %s88_s30 }
  0x1e   :  { %p1630_p10 = scmp.ne.s32.totalorder %s88_s30, %s1629_s13  ;;  %p1635_p12 = scmp.lt.s32.totalorder %s1629_s13, %s1629_s13 }
  0x20   :  { %p1636_p13 = por %p1635_p12, %p1634_p11 }
  0x22   :  { %p1637_p0 = pnand %p1636_p13, %p1630_p10 }
  0x24   :  { %1640 = shalt.err (!%p1637_p0)
}
  0x25   :  { %s1845_s14 = smov 64   ;;  %s1846_s15 = smov 4  }
  0x26   :  { %93 = dma.hbm_to_vmem [thread:$0]  %s2082_s6, 1024, %s88_s30, [#allocation14], %s1845_s14, %s1845_s14, %s1846_s15  }
  0x27   :  { %s1649_s17 = scalar_lea.vmem %s30_s1, 384  ;;  %p1654_p2 = scmp.lt.s32.totalorder %s30_s1, %s30_s1 }
  0x28   :  { %p1650_p1 = scmp.ne.s32.totalorder %s30_s1, %s1649_s17  ;;  %p1655_p3 = scmp.lt.s32.totalorder %s1649_s17, %s1649_s17 }
  0x2a   :  { %p1656_p4 = por %p1655_p3, %p1654_p2 }
  0x2c   :  { %p1657_p5 = pnand %p1656_p4, %p1650_p1 }
  0x2e   :  { %1660 = shalt.err (!%p1657_p5)
}
  0x2f   :  { %35 = dma.hbm_to_vmem [thread:$0]  %s2076_s0, 384, %s30_s1, [#allocation5], %s1845_s14, %s1845_s14, %s1846_s15  }
  0x30   :  { %s1847_s20 = smov [#allocation9]   ;;  %s1848_s22 = smov [#allocation12]  }
  0x31   :  { %s52_s21 = sshll.u32 %s1847_s20, 4  ;;  %s73_s23 = sshll.u32 %s1848_s22, 4  ;;  %s53_s21 = int_to_ptr.vmem [resolvable:$true] %s52_s21  ;;  %s74_s23 = int_to_ptr.vmem [resolvable:$true] %s73_s23 }
  0x32   :  { %s1669_s6 = scalar_lea.vmem %s53_s21, 128  ;;  %p1674_p7 = scmp.lt.s32.totalorder %s53_s21, %s53_s21 }
  0x33   :  { %p1670_p6 = scmp.ne.s32.totalorder %s53_s21, %s1669_s6  ;;  %p1675_p8 = scmp.lt.s32.totalorder %s1669_s6, %s1669_s6 }
  0x35   :  { %p1676_p9 = por %p1675_p8, %p1674_p7 }
  0x37   :  { %p1677_p10 = pnand %p1676_p9, %p1670_p6 }
  0x39   :  { %1680 = shalt.err (!%p1677_p10)
}
  0x3a   :  { %55 = dma.hbm_to_vmem [thread:$0]  %s2078_s2, 128, %s53_s21, [#allocation8]  }
  0x3b   :  { %s1689_s28 = scalar_lea.vmem %s74_s23, 4096  ;;  %p1694_p12 = scmp.lt.s32.totalorder %s74_s23, %s74_s23 }
  0x3c   :  { %p1690_p11 = scmp.ne.s32.totalorder %s74_s23, %s1689_s28  ;;  %p1695_p13 = scmp.lt.s32.totalorder %s1689_s28, %s1689_s28 }
  0x3e   :  { %p1696_p0 = por %p1695_p13, %p1694_p12 }
  0x40   :  { %p1697_p1 = pnand %p1696_p0, %p1690_p11 }
  0x42   :  { %1700 = shalt.err (!%p1697_p1)
}
  0x43   :  { %79 = dma.hbm_to_vmem [thread:$0]  %s2080_s4, 4096, %s74_s23, [#allocation11], %s1841_s25, %s1841_s25, %s1842_s26  }
  0x44   :  { %s1849_s30 = smov [#allocation15]  }
  0x45   :  { %s99_s12 = sshll.u32 %s1849_s30, 4  ;;  %s100_s12 = int_to_ptr.vmem [resolvable:$true] %s99_s12 }
  0x46   :  { %s1709_s1 = scalar_lea.vmem %s100_s12, 1024  ;;  %p1714_p3 = scmp.lt.s32.totalorder %s100_s12, %s100_s12 }
  0x47   :  { %p1710_p2 = scmp.ne.s32.totalorder %s100_s12, %s1709_s1  ;;  %p1715_p4 = scmp.lt.s32.totalorder %s1709_s1, %s1709_s1 }
  0x49   :  { %p1716_p5 = por %p1715_p4, %p1714_p3 }
  0x4b   :  { %p1717_p6 = pnand %p1716_p5, %p1710_p2 }
  0x4d   :  { %1720 = shalt.err (!%p1717_p6)
}
  0x4e   :  { %105 = dma.hbm_to_vmem [thread:$0]  %s2083_s7, 1024, %s100_s12, [#allocation14], %s1845_s14, %s1845_s14, %s1846_s15  }
  0x4f   :  { %1813 = dma.done.wait [#allocation5], 384  }
  0x50   :  { %1814 = vsyncadd [#allocation5], 4294966912 }
  0x51   :  { %1815 = dma.done.wait [#allocation8], 256  }
  0x52   :  { %1816 = vsyncadd [#allocation8], 4294967040 }
  0x53   :  { %1817 = dma.done.wait [#allocation11], 8192  }
  0x54   :  { %1818 = vsyncadd [#allocation11], 4294959104 }
  0x55   :  { %1819 = dma.done.wait [#allocation14], 2048  }
  0x56   :  { %1820 = vsyncadd [#allocation14], 4294965248  ;;  %v1850_v0 = vmov 0   ;;  %v1958_v1 = vld [vmem:[#allocation7] sm:$0xff]   ;;  %v1960_v2 = vld [vmem:[#allocation9] sm:$0xff]   ;;  %v168_v38 = vlaneseq }
  0x57   :  { %398 = vmatprep.mubr.bf16.mxu0 %v1850_v0  ;;  %461 = vmatprep.mubr.bf16.mxu1 %v1850_v0  ;;  %v1450_v3 = vld [vmem:[#allocation10 + $0xe4] ss:$16 sps:$4 sm:$0xff]   ;;  %v1452_v4 = vld [vmem:[#allocation10 + $0xec] ss:$16 sps:$4 sm:$0xff]   ;;  %v1454_v5 = vld [vmem:[#allocation10 + $0xe0] ss:$16 sps:$4 sm:$0xff]  }
  0x58   :  { %366 = vmatprep.subr.bf16.mxu0 %v1450_v3  ;;  %v1455_v6 = vld [vmem:[#allocation10 + $0xe8] ss:$16 sps:$4 sm:$0xff]   ;;  %429 = vmatprep.subr.bf16.mxu1 %v1452_v4  ;;  %v1456_v7 = vld [vmem:[#allocation10 + $0xc4] ss:$16 sps:$4 sm:$0xff]   ;;  %v1458_v8 = vld [vmem:[#allocation10 + $0xcc] ss:$16 sps:$4 sm:$0xff]  }
  0x59   :  { %367 = vmatpush1.bf16.msra.mxu0 %v1454_v5  ;;  %430 = vmatpush1.bf16.msra.mxu1 %v1455_v6  ;;  %v1460_v9 = vld [vmem:[#allocation10 + $0xc0] ss:$16 sps:$4 sm:$0xff]   ;;  %v1461_v10 = vld [vmem:[#allocation10 + $0xc8] ss:$16 sps:$4 sm:$0xff]   ;;  %v1462_v11 = vld [vmem:[#allocation10 + $0xa4] ss:$16 sps:$4 sm:$0xff]  }
  0x5a   :  { %368 = vmatprep.subr.bf16.mxu0 %v1456_v7  ;;  %431 = vmatprep.subr.bf16.mxu1 %v1458_v8  ;;  %v1464_v12 = vld [vmem:[#allocation10 + $0xac] ss:$16 sps:$4 sm:$0xff]   ;;  %v1466_v13 = vld [vmem:[#allocation10 + $0xa0] ss:$16 sps:$4 sm:$0xff]   ;;  %v1467_v14 = vld [vmem:[#allocation10 + $0xa8] ss:$16 sps:$4 sm:$0xff]  }
  0x5b   :  { %v1468_v15 = vld [vmem:[#allocation10 + $0x84] ss:$16 sps:$4 sm:$0xff]   ;;  %v1470_v16 = vld [vmem:[#allocation10 + $0x8c] ss:$16 sps:$4 sm:$0xff]   ;;  %v1472_v17 = vld [vmem:[#allocation10 + $0x80] ss:$16 sps:$4 sm:$0xff]  }
  0x5c   :  { %v1473_v18 = vld [vmem:[#allocation10 + $0x88] ss:$16 sps:$4 sm:$0xff]   ;;  %v1474_v19 = vld [vmem:[#allocation10 + $0x64] ss:$16 sps:$4 sm:$0xff]   ;;  %v1476_v20 = vld [vmem:[#allocation10 + $0x6c] ss:$16 sps:$4 sm:$0xff]  }
  0x5d   :  { %369 = vmatpush1.bf16.msra.mxu0 %v1460_v9  ;;  %432 = vmatpush1.bf16.msra.mxu1 %v1461_v10  ;;  %v1478_v21 = vld [vmem:[#allocation10 + $0x60] ss:$16 sps:$4 sm:$0xff]   ;;  %v1479_v22 = vld [vmem:[#allocation10 + $0x68] ss:$16 sps:$4 sm:$0xff]   ;;  %v1480_v23 = vld [vmem:[#allocation10 + $0x44] ss:$16 sps:$4 sm:$0xff]  }
  0x5e   :  { %370 = vmatprep.subr.bf16.mxu0 %v1462_v11  ;;  %433 = vmatprep.subr.bf16.mxu1 %v1464_v12  ;;  %v1482_v24 = vld [vmem:[#allocation10 + $0x4c] ss:$16 sps:$4 sm:$0xff]   ;;  %v1484_v25 = vld [vmem:[#allocation10 + $0x40] ss:$16 sps:$4 sm:$0xff]   ;;  %v1485_v26 = vld [vmem:[#allocation10 + $0x48] ss:$16 sps:$4 sm:$0xff]  }
  0x5f   :  { %v1486_v27 = vld [vmem:[#allocation10 + $0x24] ss:$16 sps:$4 sm:$0xff]   ;;  %v1488_v28 = vld [vmem:[#allocation10 + $0x2c] ss:$16 sps:$4 sm:$0xff]   ;;  %v1490_v29 = vld [vmem:[#allocation10 + $0x20] ss:$16 sps:$4 sm:$0xff]  }
  0x60   :  { %v1491_v30 = vld [vmem:[#allocation10 + $0x28] ss:$16 sps:$4 sm:$0xff]   ;;  %v1492_v31 = vld [vmem:[#allocation10 + $0x4] ss:$16 sps:$4 sm:$0xff]   ;;  %v1494_v32 = vld [vmem:[#allocation10 + $0xc] ss:$16 sps:$4 sm:$0xff]  }
  0x61   :  { %371 = vmatpush1.bf16.msra.mxu0 %v1466_v13  ;;  %434 = vmatpush1.bf16.msra.mxu1 %v1467_v14  ;;  %v1496_v33 = vld [vmem:[#allocation10] ss:$16 sps:$4 sm:$0xff]   ;;  %v1497_v34 = vld [vmem:[#allocation10 + $0x8] ss:$16 sps:$4 sm:$0xff]   ;;  %v169_v39 = vshrl.u32 %v168_v38, 7 }
  0x62   :  { %372 = vmatprep.subr.bf16.mxu0 %v1468_v15  ;;  %435 = vmatprep.subr.bf16.mxu1 %v1470_v16  ;;  %v1498_v35 = vld [vmem:[#allocation4] sm:$0xff]   ;;  %v1499_v36 = vld [vmem:[#allocation4 + $0x8] sm:$0xff]   ;;  %v1500_v37 = vld [vmem:[#allocation4 + $0x10] sm:$0xff]  }
  0x63   :  { %v170_v40 = vsub.s32 0, %v169_v39  ;;  %v166_v41 = vld [vmem:[%s2081_s5] sm:$0xf]  ;;  %v178_v42 = vsub.s32 2, %v169_v39  ;;  %v174_v43 = vsub.s32 1, %v169_v39  ;;  %v182_v44 = vsub.s32 3, %v169_v39 }
  0x64   :  { %s2007_s5 = smov 0  }
  0x65   :  { %373 = vmatpush1.bf16.msra.mxu0 %v1472_v17  ;;  %436 = vmatpush1.bf16.msra.mxu1 %v1473_v18  ;;  %v1969_v45 = vrot.slane %v166_v41, %v170_v40  ;;  %v1971_v46 = vrot.slane %v166_v41, %v178_v42  ;;  %v1973_v47 = vrot.slane %v166_v41, %v174_v43 }
  0x66   :  { %374 = vmatprep.subr.bf16.mxu0 %v1474_v19  ;;  %437 = vmatprep.subr.bf16.mxu1 %v1476_v20  ;;  %v1975_v49 = vrot.slane %v166_v41, %v182_v44 }
  0x69   :  { %375 = vmatpush1.bf16.msra.mxu0 %v1478_v21  ;;  %438 = vmatpush1.bf16.msra.mxu1 %v1479_v22 }
  0x6a   :  { %376 = vmatprep.subr.bf16.mxu0 %v1480_v23  ;;  %439 = vmatprep.subr.bf16.mxu1 %v1482_v24 }
  0x6d   :  { %377 = vmatpush1.bf16.msra.mxu0 %v1484_v25  ;;  %440 = vmatpush1.bf16.msra.mxu1 %v1485_v26 }
  0x6e   :  { %378 = vmatprep.subr.bf16.mxu0 %v1486_v27  ;;  %441 = vmatprep.subr.bf16.mxu1 %v1488_v28 }
  0x71   :  { %379 = vmatpush1.bf16.msra.mxu0 %v1490_v29  ;;  %442 = vmatpush1.bf16.msra.mxu1 %v1491_v30 }
  0x72   :  { %380 = vmatprep.subr.bf16.mxu0 %v1492_v31  ;;  %443 = vmatprep.subr.bf16.mxu1 %v1494_v32 }
  0x75   :  { %381 = vmatpush1.bf16.msra.mxu0 %v1496_v33  ;;  %444 = vmatpush1.bf16.msra.mxu1 %v1497_v34 }
  0x78   :  { %399 = vmatmul.mubr.bf16.vlgmr.msra.gmra.mxu0 %v1498_v35  ;;  %462 = vmatmul.mubr.bf16.vlgmr.msra.gmra.mxu1 %v1498_v35 }
  0x79   :  { %408 = vmatprep.mubr.bf16.mxu0 %v1850_v0  ;;  %471 = vmatprep.mubr.bf16.mxu1 %v1850_v0 }
  0x80   :  { %409 = vmatmul.mubr.bf16.gmra.mxu0 %v1499_v36  ;;  %472 = vmatmul.mubr.bf16.gmra.mxu1 %v1499_v36 }
  0x81   :  { %418 = vmatprep.mubr.bf16.mxu0 %v1850_v0  ;;  %481 = vmatprep.mubr.bf16.mxu1 %v1850_v0 }
  0x88   :  { %419 = vmatmul.mubr.bf16.gmra.mxu0 %v1500_v37  ;;  %482 = vmatmul.mubr.bf16.gmra.mxu1 %v1500_v37 }
 0x138   :  { %v400_v48 = vpop.f32.mrf.mxu0  ;;  %v463_v51 = vpop.f32.mrf.mxu1 }
 0x139   :  { %v401_v50 = vadd.f32 %v400_v48, %v1969_v45  ;;  %v464_v52 = vadd.f32 %v463_v51, %v1971_v46 }
 0x13a   :  { %v402_v53 = vpop.f32.mrf.mxu0  ;;  %v465_v55 = vpop.f32.mrf.mxu1 }
 0x13b   :  { %492 = vst [vmem:[#allocation2] sm:$0xff] %v401_v50  ;;  %v403_v54 = vadd.f32 %v402_v53, %v1973_v47  ;;  %494 = vst [vmem:[#allocation2 + $0x10] sm:$0xff] %v464_v52  ;;  %v466_v56 = vadd.f32 %v465_v55, %v1975_v49 }
 0x13c   :  { %v404_v57 = vpop.f32.mrf.mxu0  ;;  %v467_v59 = vpop.f32.mrf.mxu1 }
 0x13d   :  { %493 = vst [vmem:[#allocation2 + $0x8] sm:$0xff] %v403_v54  ;;  %v405_v58 = vadd.f32 %v404_v57, %v1969_v45  ;;  %495 = vst [vmem:[#allocation2 + $0x18] sm:$0xff] %v466_v56  ;;  %v468_v60 = vadd.f32 %v467_v59, %v1971_v46 }
 0x13e   :  { %v406_v61 = vpop.f32.mrf.mxu0  ;;  %v469_v63 = vpop.f32.mrf.mxu1 }
 0x13f   :  { %496 = vst [vmem:[#allocation2 + $0x20] sm:$0xff] %v405_v58  ;;  %v407_v62 = vadd.f32 %v406_v61, %v1973_v47  ;;  %498 = vst [vmem:[#allocation2 + $0x30] sm:$0xff] %v468_v60  ;;  %v470_v0 = vadd.f32 %v469_v63, %v1975_v49 }
 0x140   :  { %v410_v3 = vpop.f32.mrf.mxu0  ;;  %v473_v5 = vpop.f32.mrf.mxu1 }
 0x141   :  { %497 = vst [vmem:[#allocation2 + $0x28] sm:$0xff] %v407_v62  ;;  %v411_v4 = vadd.f32 %v410_v3, %v1969_v45  ;;  %499 = vst [vmem:[#allocation2 + $0x38] sm:$0xff] %v470_v0  ;;  %v474_v6 = vadd.f32 %v473_v5, %v1971_v46 }
 0x142   :  { %v412_v7 = vpop.f32.mrf.mxu0  ;;  %v475_v9 = vpop.f32.mrf.mxu1 }
 0x143   :  { %500 = vst [vmem:[#allocation2 + $0x40] sm:$0xff] %v411_v4  ;;  %v413_v8 = vadd.f32 %v412_v7, %v1973_v47  ;;  %502 = vst [vmem:[#allocation2 + $0x50] sm:$0xff] %v474_v6  ;;  %v476_v10 = vadd.f32 %v475_v9, %v1975_v49 }
 0x144   :  { %v414_v11 = vpop.f32.mrf.mxu0  ;;  %v477_v13 = vpop.f32.mrf.mxu1 }
 0x145   :  { %501 = vst [vmem:[#allocation2 + $0x48] sm:$0xff] %v413_v8  ;;  %v415_v12 = vadd.f32 %v414_v11, %v1969_v45  ;;  %503 = vst [vmem:[#allocation2 + $0x58] sm:$0xff] %v476_v10  ;;  %v478_v14 = vadd.f32 %v477_v13, %v1971_v46 }
 0x146   :  { %v416_v15 = vpop.f32.mrf.mxu0  ;;  %v479_v17 = vpop.f32.mrf.mxu1 }
 0x147   :  { %504 = vst [vmem:[#allocation2 + $0x60] sm:$0xff] %v415_v12  ;;  %v417_v16 = vadd.f32 %v416_v15, %v1973_v47  ;;  %506 = vst [vmem:[#allocation2 + $0x70] sm:$0xff] %v478_v14  ;;  %v480_v18 = vadd.f32 %v479_v17, %v1975_v49 }
 0x148   :  { %v420_v19 = vpop.f32.mrf.mxu0  ;;  %v483_v21 = vpop.f32.mrf.mxu1 }
 0x149   :  { %505 = vst [vmem:[#allocation2 + $0x68] sm:$0xff] %v417_v16  ;;  %v421_v20 = vadd.f32 %v420_v19, %v1969_v45  ;;  %507 = vst [vmem:[#allocation2 + $0x78] sm:$0xff] %v480_v18  ;;  %v484_v22 = vadd.f32 %v483_v21, %v1971_v46 }
 0x14a   :  { %v422_v23 = vpop.f32.mrf.mxu0  ;;  %v485_v25 = vpop.f32.mrf.mxu1 }
 0x14b   :  { %508 = vst [vmem:[#allocation2 + $0x80] sm:$0xff] %v421_v20  ;;  %v423_v24 = vadd.f32 %v422_v23, %v1973_v47  ;;  %510 = vst [vmem:[#allocation2 + $0x90] sm:$0xff] %v484_v22  ;;  %v486_v26 = vadd.f32 %v485_v25, %v1975_v49 }
 0x14c   :  { %v424_v27 = vpop.f32.mrf.mxu0  ;;  %v487_v29 = vpop.f32.mrf.mxu1 }
 0x14d   :  { %509 = vst [vmem:[#allocation2 + $0x88] sm:$0xff] %v423_v24  ;;  %v425_v28 = vadd.f32 %v424_v27, %v1969_v45  ;;  %511 = vst [vmem:[#allocation2 + $0x98] sm:$0xff] %v486_v26  ;;  %v488_v30 = vadd.f32 %v487_v29, %v1971_v46 }
 0x14e   :  { %v426_v31 = vpop.f32.mrf.mxu0  ;;  %v489_v33 = vpop.f32.mrf.mxu1 }
 0x14f   :  { %512 = vst [vmem:[#allocation2 + $0xa0] sm:$0xff] %v425_v28  ;;  %v427_v32 = vadd.f32 %v426_v31, %v1973_v47  ;;  %514 = vst [vmem:[#allocation2 + $0xb0] sm:$0xff] %v488_v30  ;;  %v490_v34 = vadd.f32 %v489_v33, %v1975_v49 }
 0x151   :  { %513 = vst [vmem:[#allocation2 + $0xa8] sm:$0xff] %v427_v32  ;;  %515 = vst [vmem:[#allocation2 + $0xb8] sm:$0xff] %v490_v34 }
 0x152 LB: > { %v1501_v35 = vld [vmem:[#allocation12 + $0xe4] ss:$16 sps:$4 sm:$0xff]   ;;  %v1503_v36 = vld [vmem:[#allocation12 + $0xe0] ss:$16 sps:$4 sm:$0xff]   ;;  %v1851_v37 = vmov 0   ;;  %v536_v5 = vpack.c.bf16 %v1833_v1, %v1833_v1  ;;  %s1243_s25 = sshll.u32 %s1837_s5, 3  ;;  %s1837_s5 = sphi %s2007_s5, %s523_s5   ;;  %v1833_v1 = vphi %v1958_v1, %v2089_v1   ;;  %v1829_v2 = vphi %v1960_v2, %v2088_v2  }
 0x153   : > { %761 = vmatprep.mubr.bf16.mxu0 %v1851_v37  ;;  %802 = vmatprep.mubr.bf16.mxu1 %v1851_v37  ;;  %v1504_v38 = vld [vmem:[#allocation12 + $0xc4] ss:$16 sps:$4 sm:$0xff]   ;;  %v1506_v39 = vld [vmem:[#allocation12 + $0xc0] ss:$16 sps:$4 sm:$0xff]   ;;  %v1512_v41 = vld [vmem:[#allocation12 + $0xec] ss:$16 sps:$4 sm:$0xff]  }
 0x154   : > { %729 = vmatprep.subr.bf16.mxu0 %v1501_v35  ;;  %v1507_v40 = vld [vmem:[#allocation12 + $0xa4] ss:$16 sps:$4 sm:$0xff]   ;;  %v1515_v42 = vld [vmem:[#allocation12 + $0xe8] ss:$16 sps:$4 sm:$0xff]   ;;  %v1509_v43 = vld [vmem:[#allocation12 + $0xa0] ss:$16 sps:$4 sm:$0xff]   ;;  %770 = vmatprep.subr.bf16.mxu1 %v1512_v41 }
 0x155   : > { %730 = vmatpush1.bf16.msra.mxu0 %v1503_v36  ;;  %v1510_v44 = vld [vmem:[#allocation12 + $0x84] ss:$16 sps:$4 sm:$0xff]   ;;  %771 = vmatpush1.bf16.msra.mxu1 %v1515_v42  ;;  %v1518_v45 = vld [vmem:[#allocation12 + $0xcc] ss:$16 sps:$4 sm:$0xff]   ;;  %v1521_v46 = vld [vmem:[#allocation12 + $0xc8] ss:$16 sps:$4 sm:$0xff]  }
 0x156   : > { %731 = vmatprep.subr.bf16.mxu0 %v1504_v38  ;;  %772 = vmatprep.subr.bf16.mxu1 %v1518_v45  ;;  %v1514_v47 = vld [vmem:[#allocation12 + $0x80] ss:$16 sps:$4 sm:$0xff]   ;;  %v1516_v48 = vld [vmem:[#allocation12 + $0x64] ss:$16 sps:$4 sm:$0xff]   ;;  %v1524_v49 = vld [vmem:[#allocation12 + $0xac] ss:$16 sps:$4 sm:$0xff]  }
 0x157   : > { %v1527_v50 = vld [vmem:[#allocation12 + $0xa8] ss:$16 sps:$4 sm:$0xff]   ;;  %v1530_v51 = vld [vmem:[#allocation12 + $0x8c] ss:$16 sps:$4 sm:$0xff]   ;;  %v1520_v52 = vld [vmem:[#allocation12 + $0x60] ss:$16 sps:$4 sm:$0xff]  }
 0x158   : > { %v1522_v53 = vld [vmem:[#allocation12 + $0x44] ss:$16 sps:$4 sm:$0xff]   ;;  %v1533_v54 = vld [vmem:[#allocation12 + $0x88] ss:$16 sps:$4 sm:$0xff]   ;;  %v1536_v55 = vld [vmem:[#allocation12 + $0x6c] ss:$16 sps:$4 sm:$0xff]  }
 0x159   : > { %732 = vmatpush1.bf16.msra.mxu0 %v1506_v39  ;;  %773 = vmatpush1.bf16.msra.mxu1 %v1521_v46  ;;  %v1526_v56 = vld [vmem:[#allocation12 + $0x40] ss:$16 sps:$4 sm:$0xff]   ;;  %v1528_v57 = vld [vmem:[#allocation12 + $0x24] ss:$16 sps:$4 sm:$0xff]   ;;  %v1539_v58 = vld [vmem:[#allocation12 + $0x68] ss:$16 sps:$4 sm:$0xff]  }
 0x15a   : > { %733 = vmatprep.subr.bf16.mxu0 %v1507_v40  ;;  %774 = vmatprep.subr.bf16.mxu1 %v1524_v49  ;;  %v1540_v59 = vld [vmem:[#allocation12 + $0x4c] ss:$16 sps:$4 sm:$0xff]   ;;  %v1532_v60 = vld [vmem:[#allocation12 + $0x20] ss:$16 sps:$4 sm:$0xff]   ;;  %v1534_v61 = vld [vmem:[#allocation12 + $0x4] ss:$16 sps:$4 sm:$0xff]  }
 0x15b   : > { %v1542_v62 = vld [vmem:[#allocation12 + $0x48] ss:$16 sps:$4 sm:$0xff]   ;;  %v1543_v63 = vld [vmem:[#allocation12 + $0x2c] ss:$16 sps:$4 sm:$0xff]   ;;  %v1538_v0 = vld [vmem:[#allocation12] ss:$16 sps:$4 sm:$0xff]  }
 0x15c   : > { %v1545_v3 = vld [vmem:[#allocation12 + $0x28] ss:$16 sps:$4 sm:$0xff]   ;;  %v1546_v4 = vld [vmem:[#allocation12 + $0xc] ss:$16 sps:$4 sm:$0xff]   ;;  %s527_s26 = sshra.s32 %s1243_s25, 3  ;;  %s839_s17 = scalar_lea.vmem [#allocation3], %s1243_s25 }
 0x15d   : > { %734 = vmatpush1.bf16.msra.mxu0 %v1509_v43  ;;  %775 = vmatpush1.bf16.msra.mxu1 %v1527_v50  ;;  %v1548_v6 = vld [vmem:[#allocation12 + $0x8] ss:$16 sps:$4 sm:$0xff]   ;;  %s1303_s16 = sshll.u32 %s527_s26, 5  ;;  %s523_s5 = sadd.s32 1, %s1837_s5  }
 0x15e   : > { %735 = vmatprep.subr.bf16.mxu0 %v1510_v44  ;;  %776 = vmatprep.subr.bf16.mxu1 %v1530_v51  ;;  %s531_s3 = scalar_lea.vmem [#allocation2], %s1303_s16  ;;  %p520_p7 = scmp.ge.s32.totalorder %s523_s5, 6  }
 0x15f   : > { %v532_v7 = vld [vmem:[%s531_s3] sm:$0xff]  ;;  %v533_v9 = vld [vmem:[%s531_s3 + $0x8] sm:$0xff]  ;;  %v535_v18 = vld [vmem:[%s531_s3 + $0x18] sm:$0xff]  ;;  %v1852_v41 = vmov (%p520_p7), 0.0   ;;  %vm1853_vm0 = vmmov (%p520_p7), 0   ;;  %s1854_s18 = smov (%p520_p7), [#allocation20]  }
 0x160   : > { %v534_v21 = vld [vmem:[%s531_s3 + $0x10] sm:$0xff]  ;;  %v1567_v43 = vld [vmem:[#allocation13 + $0x30] sm:$0xff] (%p520_p7)   ;;  %v1570_v45 = vld [vmem:[#allocation15 + $0x28] sm:$0xff] (%p520_p7)   ;;  %s1170_s19 = sshll.u32 (%p520_p7), %s1854_s18, 4  ;;  %s1171_s19 = int_to_ptr.vmem [resolvable:$true] %s1170_s19 }
 0x161   : > { %736 = vmatpush1.bf16.msra.mxu0 %v1514_v47  ;;  %777 = vmatpush1.bf16.msra.mxu1 %v1533_v54  ;;  %v1565_v40 = vld [vmem:[#allocation13 + $0x38] sm:$0xff] (%p520_p7)   ;;  %v1568_v44 = vld [vmem:[#allocation15 + $0x30] sm:$0xff] (%p520_p7)   ;;  %v1571_v46 = vld [vmem:[#allocation13 + $0x20] sm:$0xff] (%p520_p7)   ;;  %s1721_s20 = scalar_lea.vmem (%p520_p7), %s1171_s19, 128  ;;  %p1726_p9 = scmp.lt.s32.totalorder (%p520_p7), %s1171_s19, %s1171_s19 }
 0x162   : > { %737 = vmatprep.subr.bf16.mxu0 %v1516_v48  ;;  %778 = vmatprep.subr.bf16.mxu1 %v1536_v55  ;;  %v1566_v42 = vld [vmem:[#allocation15 + $0x38] sm:$0xff] (%p520_p7)   ;;  %v1572_v47 = vld [vmem:[#allocation15 + $0x20] sm:$0xff] (%p520_p7)   ;;  %v1575_v50 = vld [vmem:[#allocation13 + $0x10] sm:$0xff] (%p520_p7)   ;;  %p1722_p8 = scmp.ne.s32.totalorder (%p520_p7), %s1171_s19, %s1721_s20  ;;  %p1727_p10 = scmp.lt.s32.totalorder (%p520_p7), %s1721_s20, %s1721_s20 }
 0x163   :  { %v1573_v48 = vld [vmem:[#allocation13 + $0x18] sm:$0xff] (%p520_p7)   ;;  %v1576_v51 = vld [vmem:[#allocation15 + $0x10] sm:$0xff] (%p520_p7)   ;;  %v1579_v54 = vld [vmem:[#allocation13] sm:$0xff] (%p520_p7)  }
 0x164   :  { %v1574_v49 = vld [vmem:[#allocation15 + $0x18] sm:$0xff] (%p520_p7)   ;;  %p1728_p11 = por (%p520_p7), %p1727_p10, %p1726_p9 }
 0x165   : > { %738 = vmatpush1.bf16.msra.mxu0 %v1520_v52  ;;  %779 = vmatpush1.bf16.msra.mxu1 %v1539_v58  ;;  %v1577_v52 = vld [vmem:[#allocation13 + $0x8] sm:$0xff] (%p520_p7)  }
 0x166   : > { %739 = vmatprep.subr.bf16.mxu0 %v1522_v53  ;;  %780 = vmatprep.subr.bf16.mxu1 %v1540_v59  ;;  %v1578_v53 = vld [vmem:[#allocation15 + $0x8] sm:$0xff] (%p520_p7)   ;;  %p1729_p12 = pnand (%p520_p7), %p1728_p11, %p1722_p8 }
 0x169   : > { %740 = vmatpush1.bf16.msra.mxu0 %v1526_v56  ;;  %781 = vmatpush1.bf16.msra.mxu1 %v1542_v62 }
 0x16a   : > { %741 = vmatprep.subr.bf16.mxu0 %v1528_v57  ;;  %782 = vmatprep.subr.bf16.mxu1 %v1543_v63  ;;  %v1580_v57 = vld [vmem:[#allocation15] sm:$0xff] (%p520_p7)  }
 0x16d   : > { %742 = vmatpush1.bf16.msra.mxu0 %v1532_v60  ;;  %783 = vmatpush1.bf16.msra.mxu1 %v1545_v3 }
 0x16e   : > { %743 = vmatprep.subr.bf16.mxu0 %v1534_v61  ;;  %784 = vmatprep.subr.bf16.mxu1 %v1546_v4 }
 0x171   : > { %744 = vmatpush1.bf16.msra.mxu0 %v1538_v0  ;;  %785 = vmatpush1.bf16.msra.mxu1 %v1548_v6 }
 0x172   :  { %1349 = vmatprep.subr.bf16.mxu0 (%p520_p7), %v1852_v41  ;;  %1377 = vmatprep.subr.bf16.mxu1 (%p520_p7), %v1852_v41 }
 0x174   : > { %762 = vmatmul.mubr.bf16.vlgmr.msra.gmra.mxu0 %v536_v5  ;;  %803 = vmatmul.mubr.bf16.vlgmr.msra.gmra.mxu1 %v536_v5 }
 0x175   :  { %1350 = vmatpush3.bf16.msra.mxu0 (%p520_p7), %v1565_v40  ;;  %1365 = vmatprep.mubr.msk.bf16.mxu0 (%p520_p7), %vm1853_vm0, %v1852_v41 }
 0x176   :  { %1378 = vmatpush3.bf16.msra.mxu1 (%p520_p7), %v1566_v42  ;;  %1351 = vmatprep.subr.bf16.mxu0 (%p520_p7), %v1852_v41 }
 0x177   :  { %1379 = vmatprep.subr.bf16.mxu1 (%p520_p7), %v1852_v41  ;;  %1393 = vmatprep.mubr.msk.bf16.mxu1 (%p520_p7), %vm1853_vm0, %v1852_v41 }
 0x179   :  { %1352 = vmatpush3.bf16.msra.mxu0 (%p520_p7), %v1567_v43 }
 0x17a   :  { %1380 = vmatpush3.bf16.msra.mxu1 (%p520_p7), %v1568_v44  ;;  %1353 = vmatprep.subr.bf16.mxu0 (%p520_p7), %v1852_v41 }
 0x17b   :  { %1381 = vmatprep.subr.bf16.mxu1 (%p520_p7), %v1852_v41 }
 0x17e   :  { %1382 = vmatpush3.bf16.msra.mxu1 (%p520_p7), %v1570_v45 }
 0x17f   :  { %1383 = vmatprep.subr.bf16.mxu1 (%p520_p7), %v1852_v41 }
 0x182   :  { %1384 = vmatpush3.bf16.msra.mxu1 (%p520_p7), %v1572_v47 }
 0x183   :  { %1385 = vmatprep.subr.bf16.mxu1 (%p520_p7), %v1852_v41 }
 0x186   :  { %1386 = vmatpush3.bf16.msra.mxu1 (%p520_p7), %v1574_v49 }
 0x187   :  { %1387 = vmatprep.subr.bf16.mxu1 (%p520_p7), %v1852_v41 }
 0x18a   :  { %1388 = vmatpush3.bf16.msra.mxu1 (%p520_p7), %v1576_v51 }
 0x18b   :  { %1389 = vmatprep.subr.bf16.mxu1 (%p520_p7), %v1852_v41 }
 0x18e   :  { %1390 = vmatpush3.bf16.msra.mxu1 (%p520_p7), %v1578_v53 }
 0x18f   :  { %1391 = vmatprep.subr.bf16.mxu1 (%p520_p7), %v1852_v41 }
 0x192   :  { %1392 = vmatpush3.bf16.msra.mxu1 (%p520_p7), %v1580_v57 }
 0x234   : > { %v763_v8 = vpop.f32.mrf.mxu0  ;;  %v804_v15 = vpop.f32.mrf.mxu1 }
 0x235   : > { %v811_v10 = vadd.f32 %v763_v8, %v532_v7  ;;  %v813_v23 = vadd.f32 %v804_v15, %v534_v21 }
 0x236   : > { %v765_v11 = vpop.f32.mrf.mxu0  ;;  %v806_v17 = vpop.f32.mrf.mxu1 }
 0x237   : > { %v1278_v12 = vmul.f32 -1.442695, %v811_v10  ;;  %v812_v13 = vadd.f32 %v765_v11, %v533_v9  ;;  %v814_v22 = vadd.f32 %v806_v17, %v535_v18 }
 0x238   : > { %v767_v1 = vpop.f32.mrf.mxu0  ;;  %v808_v19 = vpop.f32.mrf.mxu1 }
 0x239   : > { %1549 = vpow2.f32 %v1278_v12  ;;  %v1279_v14 = vmul.f32 -1.442695, %v812_v13  ;;  %v1280_v24 = vmul.f32 -1.442695, %v814_v22 }
 0x23a   : > { %v768_v16 = vpop.f32.mrf.mxu0  ;;  %v809_v20 = vpop.f32.mrf.mxu1 }
 0x23b   : > { %1551 = vpow2.f32 %v1279_v14 }
 0x23c   : > { %1553 = vtanh.f32 %v813_v23 }
 0x23d   : > { %1555 = vpow2.f32 %v1280_v24 }
 0x246   : > { %v1550_v25 = vpop.eup %1549 }
 0x247   : > { %v818_v26 = vadd.f32 1.0, %v1550_v25 }
 0x248   : > { %v1552_v27 = vpop.eup %1551 }
 0x249   : > { %1557 = vrcp.f32 %v818_v26  ;;  %v824_v28 = vadd.f32 1.0, %v1552_v27  ;;  %v1554_v29 = vpop.eup %1553 }
 0x24a   : > { %v1556_v30 = vpop.eup %1555 }
 0x24b   : > { %1559 = vrcp.f32 %v824_v28  ;;  %v831_v33 = vadd.f32 1.0, %v1556_v30 }
 0x24d   : > { %1561 = vrcp.f32 %v831_v33 }
 0x256   : > { %v1558_v31 = vpop.eup %1557 }
 0x257   : > { %v835_v35 = vmul.f32 %v1558_v31, %v1554_v29 }
 0x258   : > { %v1560_v32 = vpop.eup %1559 }
 0x259   : > { %v834_v34 = vmul.f32 %v1829_v2, %v1560_v32 }
 0x25a   : > { %v1562_v37 = vpop.eup %1561 }
 0x25b   : > { %v836_v36 = vadd.f32 %v835_v35, %v834_v34  }
 0x25d   : > { %1563 = vtanh.f32 %v836_v36  ;;  %v2088_v2 = vmov %v836_v36  ;;  %842 = vst [vmem:[#allocation20] sm:$0xff] (%p520_p7), %v836_v36 }
 0x25e   :  { %v1569_v2 = vld [vmem:[#allocation13 + $0x28] sm:$0xff] (%p520_p7)  }
 0x25f   :  { %1354 = vmatpush3.bf16.msra.mxu0 (%p520_p7), %v1569_v2 }
 0x260   :  { %1355 = vmatprep.subr.bf16.mxu0 (%p520_p7), %v1852_v41 }
 0x263   :  { %1356 = vmatpush3.bf16.msra.mxu0 (%p520_p7), %v1571_v46 }
 0x264   :  { %1357 = vmatprep.subr.bf16.mxu0 (%p520_p7), %v1852_v41 }
 0x267   :  { %1358 = vmatpush3.bf16.msra.mxu0 (%p520_p7), %v1573_v48 }
 0x268   :  { %1359 = vmatprep.subr.bf16.mxu0 (%p520_p7), %v1852_v41 }
 0x269   :  { %522 = sbr.rel (!%p520_p7) target bundleno = 338 (0x152), region = 113 }
 0x26a   : > { %v1564_v38 = vpop.eup %1563 }
 0x26b   : > { %v838_v39 = vmul.f32 %v1564_v38, %v1562_v37   ;;  %1360 = vmatpush3.bf16.msra.mxu0 (%p520_p7), %v1575_v50 }
 0x26c   :  { %1361 = vmatprep.subr.bf16.mxu0 (%p520_p7), %v1852_v41 }
 0x26d   : > { %840 = vst [vmem:[%s839_s17] sm:$0xff] %v838_v39  ;;  %v2089_v1 = vmov %v838_v39  ;;  %841 = vst [vmem:[#allocation19] sm:$0xff] (%p520_p7), %v838_v39 }
 0x26f   :  { %1362 = vmatpush3.bf16.msra.mxu0 %v1577_v52 }
 0x270   :  { %1363 = vmatprep.subr.bf16.mxu0 %v1852_v41 }
 0x273   :  { %1364 = vmatpush3.bf16.msra.mxu0 %v1579_v54 }
 0x274   :  { %v843_v55 = vld [vmem:[#allocation3] sm:$0xff]  ;;  %v844_v56 = vld [vmem:[#allocation3 + $0x8] sm:$0xff]  ;;  %v845_v59 = vld [vmem:[#allocation3 + $0x10] sm:$0xff] }
 0x275   :  { %v849_v58 = vpack.c.bf16 %v844_v56, %v843_v55  ;;  %v846_v60 = vld [vmem:[#allocation3 + $0x18] sm:$0xff]  ;;  %v847_v62 = vld [vmem:[#allocation3 + $0x20] sm:$0xff]  ;;  %v848_v63 = vld [vmem:[#allocation3 + $0x28] sm:$0xff] }
 0x276   :  { %v850_v61 = vpack.c.bf16 %v846_v60, %v845_v59  ;;  %v851_v0 = vpack.c.bf16 %v848_v63, %v847_v62 }
 0x277   :  { %1366 = vmatmul.mubr.bf16.vlgmr.msra.gmra.mxu0 %v849_v58  ;;  %1394 = vmatmul.mubr.bf16.vlgmr.msra.gmra.mxu1 %v849_v58 }
 0x278   :  { %1369 = vmatprep.mubr.msk.bf16.mxu0 %vm1853_vm0, %v1852_v41  ;;  %1397 = vmatprep.mubr.msk.bf16.mxu1 %vm1853_vm0, %v1852_v41 }
 0x27f   :  { %1370 = vmatmul.mubr.bf16.gmra.mxu0 %v850_v61  ;;  %1398 = vmatmul.mubr.bf16.gmra.mxu1 %v850_v61 }
 0x280   :  { %1373 = vmatprep.mubr.msk.bf16.mxu0 %vm1853_vm0, %v1852_v41  ;;  %1401 = vmatprep.mubr.msk.bf16.mxu1 %vm1853_vm0, %v1852_v41 }
 0x287   :  { %1374 = vmatmul.mubr.bf16.gmra.mxu0 %v851_v0  ;;  %1402 = vmatmul.mubr.bf16.gmra.mxu1 %v851_v0 }
 0x288   :  { %1732 = shalt.err (!%p1729_p12)
}
 0x289   :  { %1173 = dma.vmem_to_hbm [thread:$0]  %s1171_s19, 128, %s2087_s11, [#allocation21]  }
 0x28a   :  { %s1855_s11 = smov [#allocation17]   ;;  %s1856_s6 = smov [#allocation16]  }
 0x28b   :  { %s1147_s23 = sshll.u32 %s1855_s11, 4  ;;  %s1135_s24 = sshll.u32 %s1856_s6, 4  ;;  %s1148_s23 = int_to_ptr.vmem [resolvable:$true] %s1147_s23  ;;  %s1136_s24 = int_to_ptr.vmem [resolvable:$true] %s1135_s24 }
 0x28c   :  { %s1857_s27 = smov [#allocation19]   ;;  %s1741_s0 = scalar_lea.vmem %s1148_s23, 768 }
 0x28d   :  { %s1160_s28 = sshll.u32 %s1857_s27, 4  ;;  %p1742_p13 = scmp.ne.s32.totalorder %s1148_s23, %s1741_s0  ;;  %s1161_s28 = int_to_ptr.vmem [resolvable:$true] %s1160_s28 }
 0x28e   :  { %p1746_p0 = scmp.lt.s32.totalorder %s1148_s23, %s1148_s23  ;;  %p1747_p1 = scmp.lt.s32.totalorder %s1741_s0, %s1741_s0 }
 0x290   :  { %p1748_p2 = por %p1747_p1, %p1746_p0 }
 0x292   :  { %p1749_p3 = pnand %p1748_p2, %p1742_p13 }
 0x337   :  { %v950_v3 = vpop.f32.mrf.mxu0  ;;  %v1101_v4 = vpop.f32.mrf.mxu1 }
 0x338   :  { %1124 = vst [vmem:[#allocation17] sm:$0xff] %v1101_v4 }
 0x339   :  { %v1367_v5 = vpop.f32.mrf.mxu0  ;;  %v1395_v6 = vpop.f32.mrf.mxu1 }
 0x33b   :  { %v953_v7 = vpop.f32.mrf.mxu0  ;;  %v1104_v9 = vpop.f32.mrf.mxu1 }
 0x33c   :  { %v1313_v8 = vpack.c.bf16 %v953_v7, %v950_v3  ;;  %1125 = vst [vmem:[#allocation17 + $0x8] sm:$0xff] %v1104_v9 }
 0x33d   :  { %v1368_v10 = vpop.f32.mrf.mxu0  ;;  %v1396_v11 = vpop.f32.mrf.mxu1 }
 0x33e   :  { %1314 = vst [vmem:[#allocation16] sm:$0xff] %v1313_v8  }
 0x33f   :  { %v958_v12 = vpop.f32.mrf.mxu0  ;;  %v1109_v13 = vpop.f32.mrf.mxu1 }
 0x340   :  { %1126 = vst [vmem:[#allocation17 + $0x10] sm:$0xff] %v1109_v13 }
 0x341   :  { %v1371_v1 = vpop.f32.mrf.mxu0  ;;  %v1399_v14 = vpop.f32.mrf.mxu1 }
 0x343   :  { %v961_v15 = vpop.f32.mrf.mxu0  ;;  %v1112_v17 = vpop.f32.mrf.mxu1 }
 0x344   :  { %v1318_v16 = vpack.c.bf16 %v961_v15, %v958_v12  ;;  %1127 = vst [vmem:[#allocation17 + $0x18] sm:$0xff] %v1112_v17 }
 0x345   :  { %v1372_v18 = vpop.f32.mrf.mxu0  ;;  %v1400_v19 = vpop.f32.mrf.mxu1 }
 0x346   :  { %1325 = vst [vmem:[#allocation16 + $0x8] sm:$0xff] %v1318_v16  }
 0x347   :  { %v966_v20 = vpop.f32.mrf.mxu0  ;;  %v1117_v21 = vpop.f32.mrf.mxu1 }
 0x348   :  { %1128 = vst [vmem:[#allocation17 + $0x20] sm:$0xff] %v1117_v21 }
 0x349   :  { %v1375_v22 = vpop.f32.mrf.mxu0  ;;  %v1403_v23 = vpop.f32.mrf.mxu1 }
 0x34b   :  { %v969_v24 = vpop.f32.mrf.mxu0  ;;  %v1120_v26 = vpop.f32.mrf.mxu1 }
 0x34c   :  { %v1323_v25 = vpack.c.bf16 %v969_v24, %v966_v20  ;;  %1129 = vst [vmem:[#allocation17 + $0x28] sm:$0xff] %v1120_v26 }
 0x34d   :  { %v1376_v27 = vpop.f32.mrf.mxu0  ;;  %v1404_v28 = vpop.f32.mrf.mxu1 }
 0x34e   :  { %1326 = vst [vmem:[#allocation16 + $0x10] sm:$0xff] %v1323_v25  }
 0x34f   :  { %1752 = shalt.err (!%p1749_p3)
}
 0x350   :  { %s1858_s29 = smov 128   ;;  %s1859_s30 = smov 8  }
 0x351   :  { %1153 = dma.vmem_to_hbm [thread:$0]  %s1148_s23, 768, %s2085_s9, [#allocation18], %s1858_s29, %s1858_s29, %s1859_s30  }
 0x352   :  { %s1761_s2 = scalar_lea.vmem %s1136_s24, 384  ;;  %p1766_p5 = scmp.lt.s32.totalorder %s1136_s24, %s1136_s24 }
 0x353   :  { %p1762_p4 = scmp.ne.s32.totalorder %s1136_s24, %s1761_s2  ;;  %p1767_p6 = scmp.lt.s32.totalorder %s1761_s2, %s1761_s2 }
 0x355   :  { %p1768_p7 = por %p1767_p6, %p1766_p5 }
 0x357   :  { %p1769_p8 = pnand %p1768_p7, %p1762_p4 }
 0x359   :  { %1772 = shalt.err (!%p1769_p8)
}
 0x35a   :  { %1141 = dma.vmem_to_hbm [thread:$0]  %s1136_s24, 384, %s2084_s8, [#allocation6], %s1845_s14, %s1845_s14, %s1846_s15  }
 0x35b   :  { %s1781_s7 = scalar_lea.vmem %s1161_s28, 128  ;;  %p1786_p10 = scmp.lt.s32.totalorder %s1161_s28, %s1161_s28 }
 0x35c   :  { %p1782_p9 = scmp.ne.s32.totalorder %s1161_s28, %s1781_s7  ;;  %p1787_p11 = scmp.lt.s32.totalorder %s1781_s7, %s1781_s7 }
 0x35e   :  { %p1788_p12 = por %p1787_p11, %p1786_p10 }
 0x360   :  { %p1789_p13 = pnand %p1788_p12, %p1782_p9 }
 0x362   :  { %1792 = shalt.err (!%p1789_p13)
}
 0x363   :  { %1163 = dma.vmem_to_hbm [thread:$0]  %s1161_s28, 128, %s2086_s10, [#allocation18]  }
 0x364   :  { %1821 = dma.done.wait [#allocation6], 384  }
 0x365   :  { %1822 = vsyncadd [#allocation6], 4294966912 }
 0x366   :  { %1823 = dma.done.wait [#allocation18], 896  }
 0x367   :  { %1824 = vsyncadd [#allocation18], 4294966400 }
 0x368   :  { %1825 = dma.done.wait [#allocation21], 128  }
 0x369   :  { %1826 = vsyncadd [#allocation21], 4294967168 }
 0x36a   :  { %1186 = vsyncpa [#allocation5], 1 }
 0x36b   :  { %1187 = vsyncpa [#allocation8], 1 }
 0x36c   :  { %1188 = vsyncpa [#allocation11], 1 }
 0x36d   :  { %1189 = vsyncpa [#allocation14], 1 }
 0x36e   :  { %1190 = vsyncpa [#allocation6], 1 }
 0x36f   :  { %1191 = vsyncpa [#allocation18], 1 }
 0x370   :  { %1192 = vsyncpa [#allocation21], 1 }

</bundles_post_ra>
